<compile_context>
chip_gen: v7x
topology: tpu7x:2x2x1
jax: 0.10.0
libtpu: 0.0.40
codegen_flags: <defaults>
</compile_context>

<pallas_src>
import jax
import jax.numpy as jnp
from jax.experimental import pallas as pl
from jax.experimental.pallas import tpu as pltpu

ALPHA = 0.2   # LeakyReLU negative slope
EPS = 1e-5    # BatchNorm eps (PyTorch default)


def _leaky(v):
    # max(v, 0.2*v) == LeakyReLU(0.2) for 0 < alpha < 1: 2 VPU ops, no select.
    return jnp.maximum(v, ALPHA * v)


def _round_up(n, m):
    return ((n + m - 1) // m) * m


# ---------------------------------------------------------------------------
# Kernel
# ---------------------------------------------------------------------------
def cnn_kernel(x_ref,
               w1_ref, a1_ref,
               w2_ref, a2_ref,
               w3_ref, a3_ref,
               fw1_ref, head_ref,
               o_ref):
    # x_ref:    (TB, 2*tw) f32    row-major interleaved [t0p0, t0p1, t1p0, ...]
    # w*_ref:   (2*Cin, 2*Cout)   fused conv block weight, compute dtype
    # a*_ref:   (3, 2*Cout) f32   rows = conv bias | BN scale | BN shift
    # fw1_ref:  (128, 32)         compute dtype
    # head_ref: (3, 32) f32       rows = fc1 bias | fc2 weight row | fc2 bias / 32
    # o_ref:    (1, 1, TB) f32    lane-dense output row
    cd = w1_ref.dtype

    def fused_conv_layer(h, w_ref, a_ref):
        # One MXU push covers both output positions of the length-2 conv.
        y = jnp.dot(h, w_ref[...], preferred_element_type=jnp.float32)
        aff = a_ref[...]                       # (3, 2*Cout) f32
        y = _leaky(y + aff[0:1, :])            # conv bias + LeakyReLU(0.2)
        return y * aff[1:2, :] + aff[2:3, :]   # BatchNorm1d (eval, folded)

    h = x_ref[...].astype(cd)                             # in-kernel cast
    h = fused_conv_layer(h, w1_ref, a1_ref)               # (TB, 2*32)   f32
    h = fused_conv_layer(h.astype(cd), w2_ref, a2_ref)    # (TB, 2*64)   f32
    h = fused_conv_layer(h.astype(cd), w3_ref, a3_ref)    # (TB, 2*128)  f32

    # MaxPool1d(2, 2) over the length-2 axis: 128-lane-aligned split + max.
    c = h.shape[-1] // 2
    h = jnp.maximum(h[:, :c], h[:, c:])                   # (TB, 128)

    # fcn head: Linear(128, 32) -> LeakyReLU -> Linear(32, 1)
    hd = head_ref[...]                                    # (3, 32) f32
    z = jnp.dot(h.astype(cd), fw1_ref[...],
                preferred_element_type=jnp.float32)
    z = _leaky(z + hd[0:1, :])                            # (TB, 32)
    # Linear(32, 1) as a VPU multiply + lane reduction; fc2 bias is pre-divided
    # by 32 and folded into the summand so no scalar extract is needed.
    o = jnp.sum(z * hd[1:2, :] + hd[2:3, :], axis=-1)     # (TB,)
    # Relayout the per-row scalars to a lane-dense (1, 1, TB) row (XLU slack).
    o_ref[...] = o.reshape(1, 1, -1).astype(o_ref.dtype)


# ---------------------------------------------------------------------------
# Parameter packing (done ONCE, outside the per-call path)
# ---------------------------------------------------------------------------
def _pack_conv_weight(w):
    """(Cout, Cin, 3) torch Conv1d weight -> (2*Cin, 2*Cout) fused block weight.

    For padding=1, length-2 sequences with packed input h = [x0 | x1]:
      [y0 | y1] = h @ [[w1, w0], [w2, w1]]   (wk = w[:,:,k].T)
    """
    wt = jnp.transpose(w, (2, 1, 0))                     # (3, Cin, Cout)
    top = jnp.concatenate([wt[1], wt[0]], axis=1)        # rows for pos0 inputs
    bot = jnp.concatenate([wt[2], wt[1]], axis=1)        # rows for pos1 inputs
    return jnp.concatenate([top, bot], axis=0)           # (2*Cin, 2*Cout)


def _pack_conv_weight_interleaved(w):
    """Same fused block weight, but rows permuted for the interleaved input
    layout h = x.reshape(B, 2*tw)  (h[:, 2t] = x[:,t,0], h[:, 2t+1] = x[:,t,1]).
    Output columns stay packed [pos0 | pos1] so later layers are unchanged."""
    wt = jnp.transpose(w, (2, 1, 0))                     # (3, Cin, Cout)
    top = jnp.concatenate([wt[1], wt[0]], axis=1)        # (Cin, 2*Cout)
    bot = jnp.concatenate([wt[2], wt[1]], axis=1)        # (Cin, 2*Cout)
    cin, two_cout = top.shape
    return jnp.stack([top, bot], axis=1).reshape(2 * cin, two_cout)


def _affine_slab(b, bn):
    """Pack conv bias + folded (eval-mode) BN scale/shift into one (3, 2C) slab."""
    gamma, beta, rmean, rvar = bn
    s = gamma / jnp.sqrt(rvar + EPS)
    t = beta - rmean * s
    return jnp.stack([jnp.concatenate([b, b]),
                      jnp.concatenate([s, s]),
                      jnp.concatenate([t, t])], axis=0).astype(jnp.float32)


def _head_slab(fb1, fw2, fb2):
    """Pack fc1 bias, fc2 weight row, and fc2 bias / 32 (folded into the
    per-lane summand of the final reduction) into one (3, 32) slab."""
    n = fb1.shape[0]
    return jnp.stack([fb1,
                      fw2[0],
                      jnp.full_like(fb1, fb2[0] / n)], axis=0).astype(jnp.float32)


def pack_params(p, compute_dtype=jnp.bfloat16):
    """Pack PyTorch-layout params into kernel-ready slabs.  Call once."""
    cd = compute_dtype
    return (
        _pack_conv_weight_interleaved(p["w1"]).astype(cd),   # (2*tw, 64)
        _affine_slab(p["b1"], p["bn1"]),                      # (3, 64)  f32
        _pack_conv_weight(p["w2"]).astype(cd),                # (64, 128)
        _affine_slab(p["b2"], p["bn2"]),                      # (3, 128) f32
        _pack_conv_weight(p["w3"]).astype(cd),                # (128, 256)
        _affine_slab(p["b3"], p["bn3"]),                      # (3, 256) f32
        p["fw1"].T.astype(cd),                                # (128, 32)
        _head_slab(p["fb1"], p["fw2"], p["fb2"]),             # (3, 32)  f32
    )


# ---------------------------------------------------------------------------
# Wrapper: tiling + pallas_call
# ---------------------------------------------------------------------------
def cnn_forward(x_ncl, packed, *, block_b=1024):
    """x_ncl: (B, tw, 2) float32 in PyTorch NCL layout. Returns (B, 1) float32.

    block_b: max batch-tile size. 1024 is safe on all generations; on v6e/v7x
    it can be raised to 2048 (re-sweep); on v5e keep <=1024 or raise
    vmem_limit_bytes explicitly.
    """
    B, tw, L = x_ncl.shape
    assert L == 2, "Linear(128, 32) head requires pooled length 1 -> L must be 2"

    # Zero-copy interleaved view of the input; cast to compute dtype in-kernel.
    x2 = x_ncl.reshape(B, 2 * tw)

    # Balanced tiles, >=2 grid steps so the 'parallel' axis actually shards
    # across both v7x TensorCores; 8-row aligned to cap padding waste.
    num_tiles = max(pl.cdiv(B, block_b), 2)
    TB = _round_up(pl.cdiv(B, num_tiles), 8)
    B_pad = num_tiles * TB
    if B_pad != B:   # only pays a copy when B doesn't divide evenly
        x2 = jnp.pad(x2, ((0, B_pad - B), (0, 0)))

    w1p, a1, w2p, a2, w3p, a3, fw1p, head = packed
    args = (x2, w1p, a1, w2p, a2, w3p, a3, fw1p, head)

    def const_spec(arr):
        # Whole array as one block with a constant index_map: fetched once and
        # kept resident in VMEM across grid steps.
        return pl.BlockSpec(arr.shape, lambda i: (0,) * arr.ndim)

    in_specs = [pl.BlockSpec((TB, 2 * tw), lambda i: (i, 0))]
    in_specs += [const_spec(a) for a in args[1:]]
    # Lane-dense output: one (1, 1, TB) f32 row per grid step.
    out_specs = pl.BlockSpec((1, 1, TB), lambda i: (i, 0, 0))

    out = pl.pallas_call(
        cnn_kernel,
        grid=(num_tiles,),
        in_specs=in_specs,
        out_specs=out_specs,
        out_shape=jax.ShapeDtypeStruct((num_tiles, 1, TB), jnp.float32),
        compiler_params=pltpu.CompilerParams(
            dimension_semantics=("parallel",),   # megacore batch split on v7x
        ),
    )(*args)
    return out.reshape(-1)[:B].reshape(B, 1)


# ---------------------------------------------------------------------------
# Parameter init + pure-JAX reference (mirrors the PyTorch module, eval-mode BN)
# ---------------------------------------------------------------------------
def init_params(key, tw):
    ks = iter(jax.random.split(key, 32))

    def uniform(shape, bound):
        return jax.random.uniform(next(ks), shape, jnp.float32, -bound, bound)

    def conv_init(cin, cout, k=3):
        bound = 1.0 / (cin * k) ** 0.5
        return uniform((cout, cin, k), bound), uniform((cout,), bound)

    def bn_init(c):
        gamma = jax.random.uniform(next(ks), (c,), jnp.float32, 0.5, 1.5)
        beta = 0.1 * jax.random.normal(next(ks), (c,), jnp.float32)
        rmean = 0.1 * jax.random.normal(next(ks), (c,), jnp.float32)
        rvar = jax.random.uniform(next(ks), (c,), jnp.float32, 0.5, 1.5)
        return gamma, beta, rmean, rvar

    def linear_init(fin, fout):
        bound = 1.0 / fin ** 0.5
        return uniform((fout, fin), bound), uniform((fout,), bound)

    w1, b1 = conv_init(tw, 32)
    w2, b2 = conv_init(32, 64)
    w3, b3 = conv_init(64, 128)
    fw1, fb1 = linear_init(128, 32)
    fw2, fb2 = linear_init(32, 1)
    return dict(w1=w1, b1=b1, bn1=bn_init(32),
                w2=w2, b2=b2, bn2=bn_init(64),
                w3=w3, b3=b3, bn3=bn_init(128),
                fw1=fw1, fb1=fb1, fw2=fw2, fb2=fb2)


def ref_forward(x, p):
    """Pure-JAX reference mirroring the PyTorch forward (eval-mode BN)."""
    def leaky(v):
        return jnp.where(v > 0, v, ALPHA * v)

    def conv1d(h, w, b):  # h: (B,Cin,L), w: (Cout,Cin,3), padding=1
        out = jax.lax.conv_general_dilated(
            h, w, window_strides=(1,), padding=((1, 1),),
            dimension_numbers=("NCH", "OIH", "NCH"))
        return out + b[None, :, None]

    def bn(h, gamma, beta, rmean, rvar):
        return ((h - rmean[None, :, None]) / jnp.sqrt(rvar[None, :, None] + EPS)
                * gamma[None, :, None] + beta[None, :, None])

    h = bn(leaky(conv1d(x, p["w1"], p["b1"])), *p["bn1"])
    h = bn(leaky(conv1d(h, p["w2"], p["b2"])), *p["bn2"])
    h = bn(leaky(conv1d(h, p["w3"], p["b3"])), *p["bn3"])
    B, C, L = h.shape
    h = jnp.max(h.reshape(B, C, L // 2, 2), axis=-1)       # MaxPool1d(2,2)
    h = h.reshape(B, -1)                                    # view(B, -1)
    h = leaky(h @ p["fw1"].T + p["fb1"])
    return h @ p["fw2"].T + p["fb2"]


if __name__ == "__main__":
    key = jax.random.PRNGKey(0)
    kp, kx = jax.random.split(key)
    B, TW, L = 2, 8, 2                      # batch=2, time-window=8, seq len=2
    params = init_params(kp, TW)
    x = jax.random.normal(kx, (B, TW, L), jnp.float32)

    ref = ref_forward(x, params)

    # f32 compute path: tight check against the PyTorch-mirroring reference.
    packed_f32 = pack_params(params, compute_dtype=jnp.float32)
    fwd = jax.jit(cnn_forward)
    out = jax.block_until_ready(fwd(x, packed_f32))
    assert out.shape == (B, 1), out.shape
    assert jnp.allclose(out, ref, rtol=1e-3, atol=1e-3), (out, ref)

    # bf16 input/weight path (MXU-native on v6e/v7x), f32 accumulation +
    # f32 elementwise math; looser tolerance for bf16 quantization.
    packed_bf16 = pack_params(params, compute_dtype=jnp.bfloat16)
    out_bf16 = jax.block_until_ready(fwd(x, packed_bf16))
    assert out_bf16.shape == (B, 1), out_bf16.shape
    assert jnp.allclose(out_bf16, ref, rtol=1e-1, atol=1e-1), (out_bf16, ref)

    print("KERNEL_OK")
</pallas_src>

<mosaic_0001>
module attributes {stable_mosaic.version = 11 : i64} {
  func.func @cnn_kernel(%arg0: i32, %arg1: memref<8x16xf32, #tpu.memory_space<vmem>>, %arg2: memref<16x64xf32, #tpu.memory_space<vmem>>, %arg3: memref<3x64xf32, #tpu.memory_space<vmem>>, %arg4: memref<64x128xf32, #tpu.memory_space<vmem>>, %arg5: memref<3x128xf32, #tpu.memory_space<vmem>>, %arg6: memref<128x256xf32, #tpu.memory_space<vmem>>, %arg7: memref<3x256xf32, #tpu.memory_space<vmem>>, %arg8: memref<128x32xf32, #tpu.memory_space<vmem>>, %arg9: memref<3x32xf32, #tpu.memory_space<vmem>>, %arg10: memref<1x1x8xf32, #tpu.memory_space<vmem>>) attributes {dimension_semantics = [#tpu.dimension_semantics<parallel>], iteration_bounds = array<i64: 2>, scalar_prefetch = 0 : i64, scratch_operands = 0 : i64, tpu.core_type = #tpu.core_type<tc>, window_params = [{transform_indices = @transform_0, window_bounds = array<i64: 8, 16>}, {pipeline_mode = #tpu.pipeline_mode<synchronous>, transform_indices = @transform_1, window_bounds = array<i64: 16, 64>}, {pipeline_mode = #tpu.pipeline_mode<synchronous>, transform_indices = @transform_2, window_bounds = array<i64: 3, 64>}, {pipeline_mode = #tpu.pipeline_mode<synchronous>, transform_indices = @transform_3, window_bounds = array<i64: 64, 128>}, {pipeline_mode = #tpu.pipeline_mode<synchronous>, transform_indices = @transform_4, window_bounds = array<i64: 3, 128>}, {pipeline_mode = #tpu.pipeline_mode<synchronous>, transform_indices = @transform_5, window_bounds = array<i64: 128, 256>}, {pipeline_mode = #tpu.pipeline_mode<synchronous>, transform_indices = @transform_6, window_bounds = array<i64: 3, 256>}, {pipeline_mode = #tpu.pipeline_mode<synchronous>, transform_indices = @transform_7, window_bounds = array<i64: 128, 32>}, {pipeline_mode = #tpu.pipeline_mode<synchronous>, transform_indices = @transform_8, window_bounds = array<i64: 3, 32>}, {transform_indices = @transform_9, window_bounds = array<i64: 1, 1, 8>}]} {
    %c0 = arith.constant 0 : index
    %c0_0 = arith.constant 0 : index
    %0 = vector.load %arg1[%c0, %c0_0] : memref<8x16xf32, #tpu.memory_space<vmem>>, vector<8x16xf32>
    %c0_1 = arith.constant 0 : index
    %c0_2 = arith.constant 0 : index
    %1 = vector.load %arg2[%c0_1, %c0_2] : memref<16x64xf32, #tpu.memory_space<vmem>>, vector<16x64xf32>
    %cst = arith.constant dense<0.000000e+00> : vector<8x64xf32>
    %2 = tpu.matmul %0, %1, %cst {dimension_numbers = #tpu.dot_dimension_numbers<[1], [0], [0], [1], [0, 0, 1, 1], [], []>} : vector<8x16xf32>, vector<16x64xf32>, vector<8x64xf32> -> vector<8x64xf32>
    %c0_3 = arith.constant 0 : index
    %c0_4 = arith.constant 0 : index
    %3 = vector.load %arg3[%c0_3, %c0_4] : memref<3x64xf32, #tpu.memory_space<vmem>>, vector<3x64xf32>
    %4 = vector.extract_strided_slice %3 {offsets = [0, 0], sizes = [1, 64], strides = [1, 1]} : vector<3x64xf32> to vector<1x64xf32>
    %5 = vector.broadcast %4 : vector<1x64xf32> to vector<8x64xf32>
    %6 = arith.addf %2, %5 : vector<8x64xf32>
    %cst_5 = arith.constant 2.000000e-01 : f32
    %7 = vector.broadcast %cst_5 : f32 to vector<8x64xf32>
    %8 = arith.mulf %7, %6 : vector<8x64xf32>
    %9 = arith.maximumf %6, %8 : vector<8x64xf32>
    %10 = vector.extract_strided_slice %3 {offsets = [1, 0], sizes = [1, 64], strides = [1, 1]} : vector<3x64xf32> to vector<1x64xf32>
    %11 = vector.broadcast %10 : vector<1x64xf32> to vector<8x64xf32>
    %12 = arith.mulf %9, %11 : vector<8x64xf32>
    %13 = vector.extract_strided_slice %3 {offsets = [2, 0], sizes = [1, 64], strides = [1, 1]} : vector<3x64xf32> to vector<1x64xf32>
    %14 = vector.broadcast %13 : vector<1x64xf32> to vector<8x64xf32>
    %15 = arith.addf %12, %14 : vector<8x64xf32>
    %c0_6 = arith.constant 0 : index
    %c0_7 = arith.constant 0 : index
    %16 = vector.load %arg4[%c0_6, %c0_7] : memref<64x128xf32, #tpu.memory_space<vmem>>, vector<64x128xf32>
    %cst_8 = arith.constant dense<0.000000e+00> : vector<8x128xf32>
    %17 = tpu.matmul %15, %16, %cst_8 {dimension_numbers = #tpu.dot_dimension_numbers<[1], [0], [0], [1], [0, 0, 1, 1], [], []>} : vector<8x64xf32>, vector<64x128xf32>, vector<8x128xf32> -> vector<8x128xf32>
    %c0_9 = arith.constant 0 : index
    %c0_10 = arith.constant 0 : index
    %18 = vector.load %arg5[%c0_9, %c0_10] : memref<3x128xf32, #tpu.memory_space<vmem>>, vector<3x128xf32>
    %19 = vector.extract_strided_slice %18 {offsets = [0, 0], sizes = [1, 128], strides = [1, 1]} : vector<3x128xf32> to vector<1x128xf32>
    %20 = vector.broadcast %19 : vector<1x128xf32> to vector<8x128xf32>
    %21 = arith.addf %17, %20 : vector<8x128xf32>
    %cst_11 = arith.constant 2.000000e-01 : f32
    %22 = vector.broadcast %cst_11 : f32 to vector<8x128xf32>
    %23 = arith.mulf %22, %21 : vector<8x128xf32>
    %24 = arith.maximumf %21, %23 : vector<8x128xf32>
    %25 = vector.extract_strided_slice %18 {offsets = [1, 0], sizes = [1, 128], strides = [1, 1]} : vector<3x128xf32> to vector<1x128xf32>
    %26 = vector.broadcast %25 : vector<1x128xf32> to vector<8x128xf32>
    %27 = arith.mulf %24, %26 : vector<8x128xf32>
    %28 = vector.extract_strided_slice %18 {offsets = [2, 0], sizes = [1, 128], strides = [1, 1]} : vector<3x128xf32> to vector<1x128xf32>
    %29 = vector.broadcast %28 : vector<1x128xf32> to vector<8x128xf32>
    %30 = arith.addf %27, %29 : vector<8x128xf32>
    %c0_12 = arith.constant 0 : index
    %c0_13 = arith.constant 0 : index
    %31 = vector.load %arg6[%c0_12, %c0_13] : memref<128x256xf32, #tpu.memory_space<vmem>>, vector<128x256xf32>
    %cst_14 = arith.constant dense<0.000000e+00> : vector<8x256xf32>
    %32 = tpu.matmul %30, %31, %cst_14 {dimension_numbers = #tpu.dot_dimension_numbers<[1], [0], [0], [1], [0, 0, 1, 1], [], []>} : vector<8x128xf32>, vector<128x256xf32>, vector<8x256xf32> -> vector<8x256xf32>
    %c0_15 = arith.constant 0 : index
    %c0_16 = arith.constant 0 : index
    %33 = vector.load %arg7[%c0_15, %c0_16] : memref<3x256xf32, #tpu.memory_space<vmem>>, vector<3x256xf32>
    %34 = vector.extract_strided_slice %33 {offsets = [0, 0], sizes = [1, 256], strides = [1, 1]} : vector<3x256xf32> to vector<1x256xf32>
    %35 = vector.broadcast %34 : vector<1x256xf32> to vector<8x256xf32>
    %36 = arith.addf %32, %35 : vector<8x256xf32>
    %cst_17 = arith.constant 2.000000e-01 : f32
    %37 = vector.broadcast %cst_17 : f32 to vector<8x256xf32>
    %38 = arith.mulf %37, %36 : vector<8x256xf32>
    %39 = arith.maximumf %36, %38 : vector<8x256xf32>
    %40 = vector.extract_strided_slice %33 {offsets = [1, 0], sizes = [1, 256], strides = [1, 1]} : vector<3x256xf32> to vector<1x256xf32>
    %41 = vector.broadcast %40 : vector<1x256xf32> to vector<8x256xf32>
    %42 = arith.mulf %39, %41 : vector<8x256xf32>
    %43 = vector.extract_strided_slice %33 {offsets = [2, 0], sizes = [1, 256], strides = [1, 1]} : vector<3x256xf32> to vector<1x256xf32>
    %44 = vector.broadcast %43 : vector<1x256xf32> to vector<8x256xf32>
    %45 = arith.addf %42, %44 : vector<8x256xf32>
    %46 = vector.extract_strided_slice %45 {offsets = [0, 0], sizes = [8, 128], strides = [1, 1]} : vector<8x256xf32> to vector<8x128xf32>
    %47 = vector.extract_strided_slice %45 {offsets = [0, 128], sizes = [8, 128], strides = [1, 1]} : vector<8x256xf32> to vector<8x128xf32>
    %48 = arith.maximumf %46, %47 : vector<8x128xf32>
    %c0_18 = arith.constant 0 : index
    %c0_19 = arith.constant 0 : index
    %49 = vector.load %arg9[%c0_18, %c0_19] : memref<3x32xf32, #tpu.memory_space<vmem>>, vector<3x32xf32>
    %c0_20 = arith.constant 0 : index
    %c0_21 = arith.constant 0 : index
    %50 = vector.load %arg8[%c0_20, %c0_21] : memref<128x32xf32, #tpu.memory_space<vmem>>, vector<128x32xf32>
    %cst_22 = arith.constant dense<0.000000e+00> : vector<8x32xf32>
    %51 = tpu.matmul %48, %50, %cst_22 {dimension_numbers = #tpu.dot_dimension_numbers<[1], [0], [0], [1], [0, 0, 1, 1], [], []>} : vector<8x128xf32>, vector<128x32xf32>, vector<8x32xf32> -> vector<8x32xf32>
    %52 = vector.extract_strided_slice %49 {offsets = [0, 0], sizes = [1, 32], strides = [1, 1]} : vector<3x32xf32> to vector<1x32xf32>
    %53 = vector.broadcast %52 : vector<1x32xf32> to vector<8x32xf32>
    %54 = arith.addf %51, %53 : vector<8x32xf32>
    %cst_23 = arith.constant 2.000000e-01 : f32
    %55 = vector.broadcast %cst_23 : f32 to vector<8x32xf32>
    %56 = arith.mulf %55, %54 : vector<8x32xf32>
    %57 = arith.maximumf %54, %56 : vector<8x32xf32>
    %58 = vector.extract_strided_slice %49 {offsets = [1, 0], sizes = [1, 32], strides = [1, 1]} : vector<3x32xf32> to vector<1x32xf32>
    %59 = vector.broadcast %58 : vector<1x32xf32> to vector<8x32xf32>
    %60 = arith.mulf %57, %59 : vector<8x32xf32>
    %61 = vector.extract_strided_slice %49 {offsets = [2, 0], sizes = [1, 32], strides = [1, 1]} : vector<3x32xf32> to vector<1x32xf32>
    %62 = vector.broadcast %61 : vector<1x32xf32> to vector<8x32xf32>
    %63 = arith.addf %60, %62 : vector<8x32xf32>
    %cst_24 = arith.constant dense<0.000000e+00> : vector<8xf32>
    %64 = vector.multi_reduction <add>, %63, %cst_24 [1] : vector<8x32xf32> to vector<8xf32>
    %65 = vector.shape_cast %64 : vector<8xf32> to vector<1x1x8xf32>
    %c0_25 = arith.constant 0 : index
    %c0_26 = arith.constant 0 : index
    %c0_27 = arith.constant 0 : index
    %66 = vector.load %arg10[%c0_25, %c0_26, %c0_27] : memref<1x1x8xf32, #tpu.memory_space<vmem>>, vector<1x1x8xf32>
    tpu.vector_store %arg10[%c0_25, %c0_26, %c0_27], %65 {strides = array<i32>} : memref<1x1x8xf32, #tpu.memory_space<vmem>>, vector<1x1x8xf32>,
    return
  }
  func.func @transform_0(%arg0: i32) -> (i32, i32) {
    %c0_i32 = arith.constant 0 : i32
    %c0_i32_0 = arith.constant 0 : i32
    return %arg0, %c0_i32 : i32, i32
  }
  func.func @transform_1(%arg0: i32) -> (i32, i32) {
    %c0_i32 = arith.constant 0 : i32
    %c0_i32_0 = arith.constant 0 : i32
    %c0_i32_1 = arith.constant 0 : i32
    return %c0_i32, %c0_i32_0 : i32, i32
  }
  func.func @transform_2(%arg0: i32) -> (i32, i32) {
    %c0_i32 = arith.constant 0 : i32
    %c0_i32_0 = arith.constant 0 : i32
    %c0_i32_1 = arith.constant 0 : i32
    return %c0_i32, %c0_i32_0 : i32, i32
  }
  func.func @transform_3(%arg0: i32) -> (i32, i32) {
    %c0_i32 = arith.constant 0 : i32
    %c0_i32_0 = arith.constant 0 : i32
    %c0_i32_1 = arith.constant 0 : i32
    return %c0_i32, %c0_i32_0 : i32, i32
  }
  func.func @transform_4(%arg0: i32) -> (i32, i32) {
    %c0_i32 = arith.constant 0 : i32
    %c0_i32_0 = arith.constant 0 : i32
    %c0_i32_1 = arith.constant 0 : i32
    return %c0_i32, %c0_i32_0 : i32, i32
  }
  func.func @transform_5(%arg0: i32) -> (i32, i32) {
    %c0_i32 = arith.constant 0 : i32
    %c0_i32_0 = arith.constant 0 : i32
    %c0_i32_1 = arith.constant 0 : i32
    return %c0_i32, %c0_i32_0 : i32, i32
  }
  func.func @transform_6(%arg0: i32) -> (i32, i32) {
    %c0_i32 = arith.constant 0 : i32
    %c0_i32_0 = arith.constant 0 : i32
    %c0_i32_1 = arith.constant 0 : i32
    return %c0_i32, %c0_i32_0 : i32, i32
  }
  func.func @transform_7(%arg0: i32) -> (i32, i32) {
    %c0_i32 = arith.constant 0 : i32
    %c0_i32_0 = arith.constant 0 : i32
    %c0_i32_1 = arith.constant 0 : i32
    return %c0_i32, %c0_i32_0 : i32, i32
  }
  func.func @transform_8(%arg0: i32) -> (i32, i32) {
    %c0_i32 = arith.constant 0 : i32
    %c0_i32_0 = arith.constant 0 : i32
    %c0_i32_1 = arith.constant 0 : i32
    return %c0_i32, %c0_i32_0 : i32, i32
  }
  func.func @transform_9(%arg0: i32) -> (i32, i32, i32) {
    %c0_i32 = arith.constant 0 : i32
    %c0_i32_0 = arith.constant 0 : i32
    %c0_i32_1 = arith.constant 0 : i32
    return %arg0, %c0_i32, %c0_i32_0 : i32, i32, i32
  }
}

</mosaic_0001>

<bundles_post_ra>
// kernel: cnn_forward.1
= control target key start
LH: loop header
LB: loop body
LE: loop exit
PB: predicated region body
PF: predicated region fallthrough
CT: control target
= control target key end

     0   :  { %14 = vsyncpa [#allocation3], 0  ;;  %s1171_s30 = smov 0   ;;  %s1376_s0 = inlined_call_operand.vmem [shape: f32[16,16], index: 0, kind: input, shape index: {}]   ;;  %s1377_s1 = inlined_call_operand.vmem [shape: f32[16,64], index: 1, kind: input, shape index: {}]   ;;  %s1378_s2 = inlined_call_operand.vmem [shape: f32[3,64], index: 2, kind: input, shape index: {}]   ;;  %s1379_s3 = inlined_call_operand.vmem [shape: f32[64,128], index: 3, kind: input, shape index: {}]   ;;  %s1380_s4 = inlined_call_operand.vmem [shape: f32[3,128], index: 4, kind: input, shape index: {}]   ;;  %s1381_s5 = inlined_call_operand.hbm [shape: f32[128,256], index: 5, kind: input, shape index: {}]   ;;  %s1382_s6 = inlined_call_operand.vmem [shape: f32[3,256], index: 6, kind: input, shape index: {}]   ;;  %s1383_s7 = inlined_call_operand.vmem [shape: f32[128,32], index: 7, kind: input, shape index: {}]   ;;  %s1384_s8 = inlined_call_operand.vmem [shape: f32[3,32], index: 8, kind: input, shape index: {}]   ;;  %s1385_s9 = inlined_call_operand.vmem [shape: f32[2,1,8], index: 9, kind: output, shape index: {}]  }
   0x1 LB: > { %s1177_s10 = sadd.s32 4294967295, %s1113_s30   ;;  %p880_p0 = scmp.ge.s32.totalorder %s1113_s30, 1  ;;  %s1113_s30 = sphi %s1171_s30, %s20_s30  }
   0x2   : > { %p245_p1 = scmp.lt.s32.totalorder %s1113_s30, 3  ;;  %s1115_s11 = smov [#allocation2]  }
   0x3   : > { %s269_s12 = sshll.u32 %s1115_s11, 4  ;;  %p1386_p3 = scmp.eq.s32.totalorder %s1177_s10, 0  ;;  %s270_s12 = int_to_ptr.vmem [resolvable:$true] %s269_s12 }
   0x4   : > { %p1181_p2 = pnand %p880_p0, %p245_p1  ;;  %s1075_s17 = scalar_lea.hbm %s1381_s5, 4096 }
   0x5   : > { %p1076_p6 = scmp.ne.s32.totalorder %s1381_s5, %s1075_s17  ;;  %p1082_p10 = scmp.lt.u32.totalorder %s1075_s17, %s1381_s5 }
   0x6   : > { %s1388_s13 = scalar_select %p1181_p2, 1, 0 }
   0x7   : > { %p1055_p4 = pneg %p1181_p2 }
   0x9   : > { %p1190_p5 = pnand %p1386_p3, %p1055_p4 }
   0xb   : > { %p1077_p7 = pneg %p1190_p5 }
   0xd   : > { %p1078_p8 = pnand %p1077_p7, %p1076_p6 }
   0xf   : > { %p1079_p9 = pneg %p1078_p8 }
  0x11   : > { %p1084_p11 = pnand %p1082_p10, %p1079_p9 }
  0x13   : > { %1087 = shalt.err (!%p1084_p11)
}
  0x14   : > { %s1088_s22 = scalar_lea.vmem %s270_s12, 4096  ;;  %p1096_p1 = scmp.lt.s32.totalorder %s270_s12, %s270_s12 }
  0x15   : > { %p1089_p12 = scmp.ne.s32.totalorder %s270_s12, %s1088_s22  ;;  %p1097_p4 = scmp.lt.s32.totalorder %s1088_s22, %s1088_s22 }
  0x17   : > { %p1091_p13 = pnand %p1089_p12, %p1077_p7  ;;  %p1098_p3 = por %p1097_p4, %p1096_p1 }
  0x19   : > { %p1092_p0 = pneg %p1091_p13 }
  0x1b   : > { %p1099_p2 = pnand %p1098_p3, %p1092_p0 }
  0x1d   : > { %1102 = shalt.err (!%p1099_p2)
}
  0x1e   : > { %s1116_s23 = smov 256   ;;  %s1117_s24 = smov 16  }
  0x1f   : > { %1058 = dma.hbm_to_vmem [thread:$0]  (!%p1190_p5), %s1381_s5, 4096, %s270_s12, [#allocation3], %s1116_s23, %s1116_s23, %s1117_s24  }
  0x20   : > { %p1390_p6 = scmp.ne.s32.totalorder %s1388_s13, 0 }
  0x21   : > { %p1391_p8 = scmp.eq.s32.totalorder (!%p1390_p6), %s1177_s10, 0 }
  0x22   : > { %301 = sbr.rel (%p1390_p6) target bundleno = 1085 (0x43d), region = 56 }
  0x29   : > { %1108 = dma.done.wait (%p1391_p8), [#allocation3], 4096   ;;  %p1392_p7 = pmov %p1391_p8 }
  0x2a   : > { %p334_p2 = scmp.lt.s32.totalorder %s1177_s10, 1  ;;  %v1118_v0 = vmov 0.0|0.0   ;;  %vm1119_vm0 = vmmov 0   ;;  %v1120_v1 = vmov 0.0   ;;  %v342_v2 = vld [vmem:[%s1377_s1] sm:$0xff]  ;;  %v343_v3 = vld [vmem:[%s1377_s1 + $0x8] sm:$0xff]  ;;  %v345_v51 = vlaneseq }
  0x2b   : > { %1110 = vsyncadd (%p1392_p7), [#allocation3], 4294963200  ;;  %980 = vmatprep.subr.bf16.mxu0 %v1118_v0  ;;  %923 = vmatprep.mubr.msk.f32.mxu0 %vm1119_vm0, %v1120_v1  ;;  %v981_v4 = vpack.c.bf16 %v343_v3, %v342_v2  ;;  %v435_v5 = vld [vmem:[%s1379_s3] sm:$0xff]  ;;  %v436_v6 = vld [vmem:[%s1379_s3 + $0x8] sm:$0xff]  ;;  %vm349_vm1 = vcmask 130048   ;;  %vm448_vm2 = vcmask 523264  }
  0x2c   : > { %s1394_s10 = smov (!%p334_p2, %s1177_s10), 1  ;;  %983 = vmatprep.subr.bf16.mxu1 %v1118_v0  ;;  %942 = vmatprep.mubr.msk.f32.mxu1 %vm1119_vm0, %v1120_v1  ;;  %v984_v7 = vpack.c.bf16 %v436_v6, %v435_v5  ;;  %v437_v9 = vld [vmem:[%s1379_s3 + $0x10] sm:$0xff]  ;;  %v438_v10 = vld [vmem:[%s1379_s3 + $0x18] sm:$0xff]  ;;  %v439_v12 = vld [vmem:[%s1379_s3 + $0x20] sm:$0xff]  ;;  %v1266_v52 = vshrl.u32 %v345_v51, 7  ;;  %vm805_vm3 = vcmask 261120  }
  0x2d   : > { %s885_s27 = sshll.u32 %s1394_s10, 3  ;;  %982 = vmatpush3.bf16.msra.mxu0 %v981_v4  ;;  %v987_v11 = vpack.c.bf16 %v438_v10, %v437_v9  ;;  %v440_v13 = vld [vmem:[%s1379_s3 + $0x28] sm:$0xff]  ;;  %v441_v15 = vld [vmem:[%s1379_s3 + $0x30] sm:$0xff]  ;;  %v442_v16 = vld [vmem:[%s1379_s3 + $0x38] sm:$0xff]  ;;  %s340_s17 = scalar_lea.vmem %s1385_s9, %s1394_s10  ;;  %vm817_vm4 = vcmask 57344  }
  0x2e   : > { %s337_s15 = scalar_lea.vmem %s1376_s0, %s885_s27  ;;  %985 = vmatpush3.bf16.msra.mxu1 %v984_v7  ;;  %v990_v14 = vpack.c.bf16 %v440_v13, %v439_v12  ;;  %v993_v17 = vpack.c.bf16 %v442_v16, %v441_v15  ;;  %v535_v18 = vld [vmem:[#allocation2 + $0x8] sm:$0xff]  ;;  %v537_v19 = vld [vmem:[#allocation2 + $0x18] sm:$0xff]  ;;  %v534_v20 = vld [vmem:[#allocation2] sm:$0xff]  ;;  %v1269_v53 = vsub.s32 0, %v1266_v52  ;;  %v1276_v56 = vsub.s32 1, %v1266_v52 }
  0x2f   : > { %v341_v8 = vld [vmem:[%s337_s15] sm:$0xff]  ;;  %986 = vmatprep.subr.bf16.mxu1 %v1118_v0  ;;  %v995_v21 = vpack.c.bf16 %v537_v19, %v535_v18  ;;  %v536_v22 = vld [vmem:[#allocation2 + $0x10] sm:$0xff]  ;;  %v539_v23 = vld [vmem:[#allocation2 + $0x28] sm:$0xff]  ;;  %v1279_v59 = vsub.s32 2, %v1266_v52 }
  0x30   : > { %924 = vmatmul.mubr.msk.f32.vlgmr.msra.gmra.mrb[0].mxu0 %vm349_vm1, %v341_v8  ;;  %v541_v24 = vld [vmem:[#allocation2 + $0x38] sm:$0xff]  ;;  %v997_v25 = vpack.c.bf16 %v536_v22, %v534_v20  ;;  %v538_v27 = vld [vmem:[#allocation2 + $0x20] sm:$0xff]  ;;  %v540_v28 = vld [vmem:[#allocation2 + $0x30] sm:$0xff] }
  0x31   : > { %650 = vmatprep.mubr.f32.mxu0 %v1120_v1  ;;  %v999_v26 = vpack.c.bf16 %v541_v24, %v539_v23  ;;  %v543_v29 = vld [vmem:[#allocation2 + $0x48] sm:$0xff]  ;;  %996 = vmatprep.subr.bf16.mxu0 %v995_v21  ;;  %v545_v30 = vld [vmem:[#allocation2 + $0x58] sm:$0xff]  ;;  %v1001_v31 = vpack.c.bf16 %v540_v28, %v538_v27  ;;  %v542_v33 = vld [vmem:[#allocation2 + $0x40] sm:$0xff] }
  0x32   : > { %988 = vmatpush3.bf16.msra.mxu1 %v987_v11  ;;  %998 = vmatpush1.bf16.msra.mxu0 %v997_v25  ;;  %v1003_v32 = vpack.c.bf16 %v545_v30, %v543_v29  ;;  %v544_v34 = vld [vmem:[#allocation2 + $0x50] sm:$0xff]  ;;  %v547_v35 = vld [vmem:[#allocation2 + $0x68] sm:$0xff]  ;;  %v549_v36 = vld [vmem:[#allocation2 + $0x78] sm:$0xff] }
  0x33   : > { %989 = vmatprep.subr.bf16.mxu1 %v1118_v0  ;;  %1000 = vmatprep.subr.bf16.mxu0 %v999_v26  ;;  %v1005_v37 = vpack.c.bf16 %v544_v34, %v542_v33  ;;  %v1007_v38 = vpack.c.bf16 %v549_v36, %v547_v35  ;;  %v546_v39 = vld [vmem:[#allocation2 + $0x60] sm:$0xff]  ;;  %v548_v40 = vld [vmem:[#allocation2 + $0x70] sm:$0xff]  ;;  %v551_v41 = vld [vmem:[#allocation2 + $0x88] sm:$0xff] }
  0x34   : > { %v553_v42 = vld [vmem:[#allocation2 + $0x98] sm:$0xff]  ;;  %v1009_v43 = vpack.c.bf16 %v548_v40, %v546_v39  ;;  %v550_v45 = vld [vmem:[#allocation2 + $0x80] sm:$0xff]  ;;  %v552_v46 = vld [vmem:[#allocation2 + $0x90] sm:$0xff] }
  0x35   : > { %v1011_v44 = vpack.c.bf16 %v553_v42, %v551_v41  ;;  %v555_v47 = vld [vmem:[#allocation2 + $0xa8] sm:$0xff]  ;;  %v557_v48 = vld [vmem:[#allocation2 + $0xb8] sm:$0xff]  ;;  %v1013_v49 = vpack.c.bf16 %v552_v46, %v550_v45  ;;  %v344_v54 = vld [vmem:[%s1378_s2] sm:$0x7] }
  0x36   : > { %991 = vmatpush3.bf16.msra.mxu1 %v990_v14  ;;  %1002 = vmatpush1.bf16.msra.mxu0 %v1001_v31  ;;  %v1015_v50 = vpack.c.bf16 %v557_v48, %v555_v47  ;;  %v348_v55 = vrot.slane %v344_v54, %v1269_v53  ;;  %v428_v62 = vrot.slane %v344_v54, %v1276_v56  ;;  %v554_v5 = vld [vmem:[#allocation2 + $0xa0] sm:$0xff]  ;;  %v556_v6 = vld [vmem:[#allocation2 + $0xb0] sm:$0xff]  ;;  %v559_v8 = vld [vmem:[#allocation2 + $0xc8] sm:$0xff] }
  0x37   : > { %992 = vmatprep.subr.bf16.mxu1 %v1118_v0  ;;  %1004 = vmatprep.subr.bf16.mxu0 %v1003_v32  ;;  %v433_v2 = vrot.slane %v344_v54, %v1279_v59  ;;  %v1017_v7 = vpack.c.bf16 %v556_v6, %v554_v5  ;;  %v561_v9 = vld [vmem:[#allocation2 + $0xd8] sm:$0xff]  ;;  %v558_v11 = vld [vmem:[#allocation2 + $0xc0] sm:$0xff]  ;;  %v560_v12 = vld [vmem:[#allocation2 + $0xd0] sm:$0xff] }
  0x38   : > { %v1019_v10 = vpack.c.bf16 %v561_v9, %v559_v8  ;;  %v1021_v13 = vpack.c.bf16 %v560_v12, %v558_v11  ;;  %v563_v14 = vld [vmem:[#allocation2 + $0xe8] sm:$0xff]  ;;  %v565_v15 = vld [vmem:[#allocation2 + $0xf8] sm:$0xff]  ;;  %v564_v18 = vld [vmem:[#allocation2 + $0xf0] sm:$0xff] }
  0x39   : > { %v1023_v16 = vpack.c.bf16 %v565_v15, %v563_v14  ;;  %v704_v20 = vld [vmem:[%s1383_s7 + $0x8] sm:$0xff]  ;;  %v705_v21 = vld [vmem:[%s1383_s7 + $0x10] sm:$0xff]  ;;  %v706_v23 = vld [vmem:[%s1383_s7 + $0x18] sm:$0xff] }
  0x3a   : > { %994 = vmatpush3.bf16.msra.mxu1 %v993_v17  ;;  %1006 = vmatpush1.bf16.msra.mxu0 %v1005_v37  ;;  %v562_v17 = vld [vmem:[#allocation2 + $0xe0] sm:$0xff]  ;;  %v1031_v24 = vpack.c.bf16 %v706_v23, %v705_v21  ;;  %v708_v26 = vld [vmem:[%s1383_s7 + $0x28] sm:$0xff]  ;;  %v709_v28 = vld [vmem:[%s1383_s7 + $0x30] sm:$0xff] }
  0x3b   : > { %1027 = vmatprep.subr.bf16.mxu1 %v1118_v0  ;;  %1008 = vmatprep.subr.bf16.mxu0 %v1007_v38  ;;  %v1025_v19 = vpack.c.bf16 %v564_v18, %v562_v17  ;;  %v707_v25 = vld [vmem:[%s1383_s7 + $0x20] sm:$0xff]  ;;  %v710_v29 = vld [vmem:[%s1383_s7 + $0x38] sm:$0xff]  ;;  %v712_v32 = vld [vmem:[%s1383_s7 + $0x48] sm:$0xff] }
  0x3c   : > { %v1034_v27 = vpack.c.bf16 %v708_v26, %v707_v25  ;;  %v1037_v30 = vpack.c.bf16 %v710_v29, %v709_v28  ;;  %v711_v31 = vld [vmem:[%s1383_s7 + $0x40] sm:$0xff]  ;;  %v713_v45 = vld [vmem:[%s1383_s7 + $0x50] sm:$0xff]  ;;  %v714_v46 = vld [vmem:[%s1383_s7 + $0x58] sm:$0xff] }
  0x3d   : > { %v1040_v33 = vpack.c.bf16 %v712_v32, %v711_v31  ;;  %v443_v34 = vld [vmem:[%s1380_s4] sm:$0x7]  ;;  %v1043_v47 = vpack.c.bf16 %v714_v46, %v713_v45  ;;  %v717_v54 = vld [vmem:[%s1383_s7 + $0x70] sm:$0xff] }
  0x3e   : > { %1010 = vmatpush1.bf16.msra.mxu0 %v1009_v43  ;;  %v447_v35 = vrot.slane %v443_v34, %v1269_v53  ;;  %v527_v40 = vrot.slane %v443_v34, %v1276_v56  ;;  %v532_v42 = vrot.slane %v443_v34, %v1279_v59  ;;  %v715_v48 = vld [vmem:[%s1383_s7 + $0x60] sm:$0xff] }
  0x3f   : > { %1012 = vmatprep.subr.bf16.mxu0 %v1011_v44 }
  0x42   : > { %1014 = vmatpush1.bf16.msra.mxu0 %v1013_v49  ;;  %v716_v49 = vld [vmem:[%s1383_s7 + $0x68] sm:$0xff] }
  0x43   : > { %1016 = vmatprep.subr.bf16.mxu0 %v1015_v50  ;;  %v1046_v50 = vpack.c.bf16 %v716_v49, %v715_v48 }
  0x46   : > { %1018 = vmatpush1.bf16.msra.mxu0 %v1017_v7 }
  0x47   : > { %1020 = vmatprep.subr.bf16.mxu0 %v1019_v10 }
  0x4a   : > { %1022 = vmatpush1.bf16.msra.mxu0 %v1021_v13 }
  0x4b   : > { %1024 = vmatprep.subr.bf16.mxu0 %v1023_v16 }
  0x4e   : > { %1026 = vmatpush1.bf16.msra.mxu0 %v1025_v19 }
 0x103   : > { %v419_v57 = vpop.f32.mrb[0].mxu0 }
 0x104   : > { %v420_v58 = vadd.f32 %v419_v57, %v348_v55  ;;  %v925_v60 = vpop.f32.mrb[1].mxu0  ;;  %v718_v55 = vld [vmem:[%s1383_s7 + $0x78] sm:$0xff] }
 0x105   : > { %v1049_v57 = vpack.c.bf16 %v718_v55, %v717_v54  ;;  %v574_v60 = vsub.s32 4, %v1266_v52 }
 0x106   : > { %v423_v61 = vmul.f32 0.2, %v420_v58 }
 0x108   : > { %v424_v63 = vmax.f32 %v420_v58, %v423_v61  ;;  %v566_v58 = vld [vmem:[%s1382_s6] sm:$0x77] }
 0x109   : > { %v571_v61 = vrot.slane %v566_v58, %v1269_v53  ;;  %v684_v8 = vrot.slane %v566_v58, %v1279_v59 }
 0x10a   : > { %v429_v3 = vmul.f32 %v428_v62, %v424_v63  ;;  %v575_v62 = vrot.slane %v566_v58, %v574_v60 }
 0x10b   : > { %v581_v63 = vrot.slane %v571_v61, %v1269_v53  ;;  %v694_v17 = vrot.slane %v684_v8, %v1279_v59 }
 0x10c   : > { %v434_v4 = vadd.f32 %v433_v2, %v429_v3  ;;  %v585_v2 = vrot.slane %v575_v62, %v1269_v53  ;;  %v687_v3 = vsub.s32 6, %v1266_v52 }
 0x10e   : > { %943 = vmatmul.mubr.msk.f32.vlgmr.msra.gmra.mrb[0].mxu1 %vm448_vm2, %v434_v4  ;;  %v664_v4 = vrot.slane %v566_v58, %v1276_v56  ;;  %v688_v11 = vrot.slane %v566_v58, %v687_v3 }
 0x10f   : > { %977 = vmatprep.mubr.msk.f32.mxu1 %vm1119_vm0, %v1120_v1  ;;  %v703_v1 = vld [vmem:[%s1383_s7] sm:$0xff] }
 0x110   : > { %v1028_v22 = vpack.c.bf16 %v704_v20, %v703_v1  ;;  %v674_v13 = vrot.slane %v664_v4, %v1276_v56  ;;  %v698_v19 = vrot.slane %v688_v11, %v1279_v59 }
 0x112   : > { %1029 = vmatpush3.bf16.msra.mxu1 %v1028_v22 }
 0x113   : > { %1030 = vmatprep.subr.bf16.mxu1 %v1118_v0 }
 0x116   : > { %1032 = vmatpush3.bf16.msra.mxu1 %v1031_v24  ;;  %v702_v24 = vld [vmem:[%s1384_s8] sm:$0x7] }
 0x117   : > { %1033 = vmatprep.subr.bf16.mxu1 %v1118_v0  ;;  %v722_v25 = vrot.slane %v702_v24, %v1269_v53  ;;  %v803_v32 = vrot.slane %v702_v24, %v1279_v59 }
 0x11a   : > { %1035 = vmatpush3.bf16.msra.mxu1 %v1034_v27 }
 0x11b   : > { %1036 = vmatprep.subr.bf16.mxu1 %v1118_v0 }
 0x11e   : > { %1038 = vmatpush3.bf16.msra.mxu1 %v1037_v30  ;;  %v798_v30 = vrot.slane %v702_v24, %v1276_v56 }
 0x11f   : > { %1039 = vmatprep.subr.bf16.mxu1 %v1118_v0 }
 0x122   : > { %1041 = vmatpush3.bf16.msra.mxu1 %v1040_v33 }
 0x123   : > { %1042 = vmatprep.subr.bf16.mxu1 %v1118_v0 }
 0x126   : > { %1044 = vmatpush3.bf16.msra.mxu1 %v1043_v47 }
 0x127   : > { %1045 = vmatprep.subr.bf16.mxu1 %v1118_v0 }
 0x12a   : > { %1047 = vmatpush3.bf16.msra.mxu1 %v1046_v50 }
 0x12b   : > { %1048 = vmatprep.subr.bf16.mxu1 %v1118_v0  ;;  %v667_v0 = vsub.s32 5, %v1266_v52 }
 0x12d   : > { %v668_v6 = vrot.slane %v566_v58, %v667_v0 }
 0x12e   : > { %1050 = vmatpush3.bf16.msra.mxu1 %v1049_v57 }
 0x12f   : > { %v678_v15 = vrot.slane %v668_v6, %v1276_v56 }
 0x1e1   : > { %v518_v36 = vpop.f32.mrb[0].mxu1 }
 0x1e2   : > { %v519_v37 = vadd.f32 %v518_v36, %v447_v35  ;;  %v944_v38 = vpop.f32.mrb[1].mxu1  ;;  %v811_v36 = vand.u32 127, %v345_v51 }
 0x1e4   : > { %v522_v39 = vmul.f32 0.2, %v519_v37 }
 0x1e6   : > { %v523_v41 = vmax.f32 %v519_v37, %v522_v39  ;;  %v814_v37 = vsub.s32 %v811_v36, %v1266_v52 }
 0x1e8   : > { %v528_v43 = vmul.f32 %v527_v40, %v523_v41 }
 0x1ea   : > { %v533_v44 = vadd.f32 %v532_v42, %v528_v43 }
 0x1ec   : > { %651 = vmatmul.mubr.f32.vlgmr.msra.gmra.mrb[2].mxu0 %v533_v44 }
 0x2bf   : > { %v652_v5 = vpop.f32.mrb[2].mxu0 }
 0x2c0   : > { %v653_v7 = vadd.f32 %v652_v5, %v581_v63  ;;  %v654_v9 = vpop.f32.mrb[3].mxu0 }
 0x2c1   : > { %v655_v10 = vadd.f32 %v654_v9, %v585_v2 }
 0x2c2   : > { %v657_v12 = vmul.f32 0.2, %v653_v7 }
 0x2c3   : > { %v658_v14 = vmul.f32 0.2, %v655_v10 }
 0x2c4   : > { %v659_v16 = vmax.f32 %v653_v7, %v657_v12 }
 0x2c5   : > { %v660_v18 = vmax.f32 %v655_v10, %v658_v14 }
 0x2c6   : > { %v679_v1 = vmul.f32 %v674_v13, %v659_v16 }
 0x2c7   : > { %v680_v20 = vmul.f32 %v678_v15, %v660_v18 }
 0x2c8   : > { %v699_v21 = vadd.f32 %v694_v17, %v679_v1 }
 0x2c9   : > { %v700_v22 = vadd.f32 %v698_v19, %v680_v20 }
 0x2cb   : > { %v701_v23 = vmax.f32 %v699_v21, %v700_v22 }
 0x2cd   : > { %978 = vmatmul.mubr.f32.vlgmr.msra.gmra.mrb[2].mxu1 %v701_v23 }
 0x3a0   : > { %v789_v26 = vpop.f32.mrb[2].mxu1 }
 0x3a1   : > { %v790_v27 = vadd.f32 %v789_v26, %v722_v25  ;;  %v979_v28 = vpop.f32.mrb[3].mxu1 }
 0x3a3   : > { %v793_v29 = vmul.f32 0.2, %v790_v27 }
 0x3a5   : > { %v794_v31 = vmax.f32 %v790_v27, %v793_v29 }
 0x3a7   : > { %v799_v33 = vmul.f32 %v798_v30, %v794_v31 }
 0x3a9   : > { %v804_v34 = vadd.f32 %v803_v32, %v799_v33 }
 0x3ab   : > { %v806_v35 = vsel %vm805_vm3, %v804_v34, 0.0 }
 0x3ac   : > { %807 = vadd.xlane.f32.xlu0 %v806_v35 }
 0x439   : > { %v808_v53 = vpop.xlane.xlu0 %807 }
 0x43a   : > { %v815_v38 = vrot.slane %v808_v53, %v814_v37 }
 0x43c   : > { %818 = vst.msk [vmem:[%s340_s17] sm:$0x1] %vm817_vm4, %v815_v38 }
 0x43d PF: > { %s20_s30 = sadd.s32 1, %s1113_s30  }
 0x43e   : > { %p17_p3 = scmp.ge.s32.totalorder %s20_s30, 4  }
 0x440   :  { %19 = sbr.rel (!%p17_p3) target bundleno = 1 (0x1), region = 91 }
 0x447   :  { %836 = vsyncpa [#allocation3], 1 }
 0x448   :  { %838 = vsyncpa [#allocation3 + $0x1], 1 }

</bundles_post_ra>
